<compile_context>
chip_gen: v5e
topology: v5e:2x2
jax: 0.10.0
libtpu: 0.0.40
codegen_flags: <defaults>
</compile_context>

<pallas_src>
import jax
import jax.numpy as jnp
from jax.experimental import pallas as pl
from jax.experimental.pallas import tpu as pltpu


def _round_up(x, m):
    return (x + m - 1) // m * m


def _graphite_kernel(z_ref, h_ref, g_ref, wt_ref, o_ref):
    # z_ref, h_ref : (Np, Kp) bf16      g_ref : (R, Kp) bf16
    # wt_ref       : (R, Kp, dp) bf16   o_ref : (Np, dp) f32
    z = z_ref[...]

    # S = Z^T @ H  -- relation independent, computed once. f32 accumulate on MXU.
    s = jax.lax.dot_general(
        z, h_ref[...], (((0,), (0,)), ((), ())),
        preferred_element_type=jnp.float32,
    ).astype(jnp.bfloat16)                                    # (Kp, Kp)

    acc = jnp.zeros(o_ref.shape, jnp.float32)
    n_rel = g_ref.shape[0]
    for r in range(n_rel):  # static unroll: R is small and known at trace time
        # T_r = S @ W_r^T  (W already pre-transposed in the wrapper)
        t = jnp.dot(s, wt_ref[r],
                    preferred_element_type=jnp.float32)        # (Kp, dp) f32
        zg = z * g_ref[r:r + 1, :]                             # (Np, Kp) bf16
        acc = acc + jnp.dot(zg, t.astype(jnp.bfloat16),
                            preferred_element_type=jnp.float32)  # (Np, dp) f32

    # TODO(synk): the module takes `activation` as a ctor arg; ReLU chosen here.
    o_ref[...] = jnp.maximum(acc, 0.0)


@jax.jit
def attentive_multi_relation_graphite(Z, H, W, G):
    """Z: (n, in_dim); H: (n, in_dim); W: (out_dim, in_dim); G: (R, in_dim)."""
    n, k = Z.shape
    assert H.shape == (n, k)
    out_dim = W.shape[0]
    R = G.shape[0]
    assert out_dim % R == 0
    d = out_dim // R

    # TPU-friendly padding (zero padding is exact for this math).
    Np = _round_up(n, 16)      # bf16 sublane tile
    Kp = _round_up(k, 128)     # contraction dim on the lane axis
    dp = _round_up(d, 128)     # lane-dense output (full-width stores)

    bf = jnp.bfloat16
    Zp = jnp.zeros((Np, Kp), bf).at[:n, :k].set(Z.astype(bf))
    Hp = jnp.zeros((Np, Kp), bf).at[:n, :k].set(H.astype(bf))
    Gp = jnp.zeros((R, Kp), bf).at[:, :k].set(G.astype(bf))
    # W_r = W[r*d:(r+1)*d, :]  (matches HW.view(n, R, d) column split); store W_r^T.
    W3 = W.reshape(R, d, k)
    Wtp = jnp.zeros((R, Kp, dp), bf).at[:, :k, :d].set(
        jnp.swapaxes(W3, 1, 2).astype(bf))

    out_p = pl.pallas_call(
        _graphite_kernel,
        out_shape=jax.ShapeDtypeStruct((Np, dp), jnp.float32),
        in_specs=[
            pl.BlockSpec(memory_space=pltpu.MemorySpace.VMEM),  # Z
            pl.BlockSpec(memory_space=pltpu.MemorySpace.VMEM),  # H
            pl.BlockSpec(memory_space=pltpu.MemorySpace.VMEM),  # G
            pl.BlockSpec(memory_space=pltpu.MemorySpace.VMEM),  # W^T per relation
        ],
        out_specs=pl.BlockSpec(memory_space=pltpu.MemorySpace.VMEM),
    )(Zp, Hp, Gp, Wtp)

    return out_p[:n, :d]


def reference_f32(Z, H, W, G):
    """Original formulation, pure f32: sum_r (Z diag(g_r) Z^T) @ (H @ W_r^T), ReLU."""
    n = Z.shape[0]
    R = G.shape[0]
    d = W.shape[0] // R
    HW = (H @ W.T).reshape(n, R, d)
    out = jnp.zeros((n, d), jnp.float32)
    for r in range(R):
        A = (Z * G[r]) @ Z.T
        out = out + A @ HW[:, r, :]
    return jnp.maximum(out, 0.0)


def reference_bf16_mimic(Z, H, W, G):
    """Rewritten formulation with the kernel's bf16 casts (tight structural check)."""
    bf, f32 = jnp.bfloat16, jnp.float32
    n = Z.shape[0]
    R = G.shape[0]
    d = W.shape[0] // R
    Zb, Hb, Wb, Gb = (x.astype(bf) for x in (Z, H, W, G))
    S = jnp.dot(Zb.T.astype(f32), Hb.astype(f32)).astype(bf)
    out = jnp.zeros((n, d), f32)
    for r in range(R):
        Wr = Wb[r * d:(r + 1) * d, :]                                   # (d, k)
        T = jnp.dot(S.astype(f32), Wr.T.astype(f32)).astype(bf)         # (k, d)
        zg = (Zb.astype(f32) * Gb[r].astype(f32)).astype(bf)            # (n, k)
        out = out + jnp.dot(zg.astype(f32), T.astype(f32))
    return jnp.maximum(out, 0.0)


if __name__ == "__main__":
    # Shapes consistent with the module's globals: n = 20, k0 = k1 = in_dim = 6.
    n, in_dim, n_relations, out_dim = 20, 6, 3, 12

    key = jax.random.PRNGKey(0)
    kz, kh, kw, kg = jax.random.split(key, 4)
    Z = jax.random.normal(kz, (n, in_dim), jnp.float32)
    H = jax.random.normal(kh, (n, in_dim), jnp.float32)
    # nn.Linear(in_dim, out_dim, bias=False) weight: (out_dim, in_dim)
    W = jax.random.normal(kw, (out_dim, in_dim), jnp.float32) * 0.3
    # Module inits G_r to zeros; use small deterministic random values so the
    # test is non-trivial.
    G = jax.random.normal(kg, (n_relations, in_dim), jnp.float32) * 0.1

    out = attentive_multi_relation_graphite(Z, H, W, G)
    out = jax.block_until_ready(out)
    assert out.shape == (n, out_dim // n_relations)

    # Tight check: same precision path -> validates indexing / padding / rewrite wiring.
    ref_m = reference_bf16_mimic(Z, H, W, G)
    assert jnp.allclose(out, ref_m, atol=1e-2, rtol=1e-2), "mismatch vs bf16-mimic reference"

    # Loose check vs full-f32 original formulation: validates the associativity
    # rewrite and bounds the bf16 quantization error.
    ref = reference_f32(Z, H, W, G)
    rel_err = jnp.max(jnp.abs(out - ref)) / (jnp.max(jnp.abs(ref)) + 1e-6)
    assert rel_err < 0.1, f"relative error vs f32 reference too large: {rel_err}"

    print("KERNEL_OK")
</pallas_src>

<mosaic_0001>
module attributes {stable_mosaic.version = 11 : i64} {
  func.func @_graphite_kernel(%arg0: memref<32x128xbf16, #tpu.memory_space<vmem>>, %arg1: memref<32x128xbf16, #tpu.memory_space<vmem>>, %arg2: memref<3x128xbf16, #tpu.memory_space<vmem>>, %arg3: memref<3x128x128xbf16, #tpu.memory_space<vmem>>, %arg4: memref<32x128xf32, #tpu.memory_space<vmem>>) attributes {dimension_semantics = [], scalar_prefetch = 0 : i64, scratch_operands = 0 : i64, tpu.core_type = #tpu.core_type<tc>} {
    %c0 = arith.constant 0 : index
    %c0_0 = arith.constant 0 : index
    %0 = vector.load %arg0[%c0, %c0_0] : memref<32x128xbf16, #tpu.memory_space<vmem>>, vector<32x128xbf16>
    %c0_1 = arith.constant 0 : index
    %c0_2 = arith.constant 0 : index
    %1 = vector.load %arg1[%c0_1, %c0_2] : memref<32x128xbf16, #tpu.memory_space<vmem>>, vector<32x128xbf16>
    %cst = arith.constant dense<0.000000e+00> : vector<128x128xf32>
    %2 = tpu.matmul %0, %1, %cst {dimension_numbers = #tpu.dot_dimension_numbers<[0], [0], [1], [1], [0, 1, 1, 1], [], []>} : vector<32x128xbf16>, vector<32x128xbf16>, vector<128x128xf32> -> vector<128x128xf32>
    %3 = arith.truncf %2 : vector<128x128xf32> to vector<128x128xbf16>
    %cst_3 = arith.constant 0.000000e+00 : f32
    %4 = vector.broadcast %cst_3 : f32 to vector<32x128xf32>
    %c0_4 = arith.constant 0 : index
    %c0_5 = arith.constant 0 : index
    %c0_6 = arith.constant 0 : index
    %5 = vector.load %arg3[%c0_4, %c0_5, %c0_6] : memref<3x128x128xbf16, #tpu.memory_space<vmem>>, vector<1x128x128xbf16>
    %6 = vector.shape_cast %5 : vector<1x128x128xbf16> to vector<128x128xbf16>
    %cst_7 = arith.constant dense<0.000000e+00> : vector<128x128xf32>
    %7 = tpu.matmul %3, %6, %cst_7 {dimension_numbers = #tpu.dot_dimension_numbers<[1], [0], [0], [1], [0, 0, 1, 1], [], []>} : vector<128x128xbf16>, vector<128x128xbf16>, vector<128x128xf32> -> vector<128x128xf32>
    %c0_8 = arith.constant 0 : index
    %c0_9 = arith.constant 0 : index
    %8 = vector.load %arg2[%c0_8, %c0_9] : memref<3x128xbf16, #tpu.memory_space<vmem>>, vector<1x128xbf16>
    %9 = vector.broadcast %8 : vector<1x128xbf16> to vector<32x128xbf16>
    %10 = arith.mulf %0, %9 : vector<32x128xbf16>
    %11 = arith.truncf %7 : vector<128x128xf32> to vector<128x128xbf16>
    %cst_10 = arith.constant dense<0.000000e+00> : vector<32x128xf32>
    %12 = tpu.matmul %10, %11, %cst_10 {dimension_numbers = #tpu.dot_dimension_numbers<[1], [0], [0], [1], [0, 0, 1, 1], [], []>} : vector<32x128xbf16>, vector<128x128xbf16>, vector<32x128xf32> -> vector<32x128xf32>
    %13 = arith.addf %4, %12 : vector<32x128xf32>
    %c1 = arith.constant 1 : index
    %c0_11 = arith.constant 0 : index
    %c0_12 = arith.constant 0 : index
    %14 = vector.load %arg3[%c1, %c0_11, %c0_12] : memref<3x128x128xbf16, #tpu.memory_space<vmem>>, vector<1x128x128xbf16>
    %15 = vector.shape_cast %14 : vector<1x128x128xbf16> to vector<128x128xbf16>
    %cst_13 = arith.constant dense<0.000000e+00> : vector<128x128xf32>
    %16 = tpu.matmul %3, %15, %cst_13 {dimension_numbers = #tpu.dot_dimension_numbers<[1], [0], [0], [1], [0, 0, 1, 1], [], []>} : vector<128x128xbf16>, vector<128x128xbf16>, vector<128x128xf32> -> vector<128x128xf32>
    %c1_14 = arith.constant 1 : index
    %c0_15 = arith.constant 0 : index
    %17 = vector.load %arg2[%c1_14, %c0_15] : memref<3x128xbf16, #tpu.memory_space<vmem>>, vector<1x128xbf16>
    %18 = vector.broadcast %17 : vector<1x128xbf16> to vector<32x128xbf16>
    %19 = arith.mulf %0, %18 : vector<32x128xbf16>
    %20 = arith.truncf %16 : vector<128x128xf32> to vector<128x128xbf16>
    %cst_16 = arith.constant dense<0.000000e+00> : vector<32x128xf32>
    %21 = tpu.matmul %19, %20, %cst_16 {dimension_numbers = #tpu.dot_dimension_numbers<[1], [0], [0], [1], [0, 0, 1, 1], [], []>} : vector<32x128xbf16>, vector<128x128xbf16>, vector<32x128xf32> -> vector<32x128xf32>
    %22 = arith.addf %13, %21 : vector<32x128xf32>
    %c2 = arith.constant 2 : index
    %c0_17 = arith.constant 0 : index
    %c0_18 = arith.constant 0 : index
    %23 = vector.load %arg3[%c2, %c0_17, %c0_18] : memref<3x128x128xbf16, #tpu.memory_space<vmem>>, vector<1x128x128xbf16>
    %24 = vector.shape_cast %23 : vector<1x128x128xbf16> to vector<128x128xbf16>
    %cst_19 = arith.constant dense<0.000000e+00> : vector<128x128xf32>
    %25 = tpu.matmul %3, %24, %cst_19 {dimension_numbers = #tpu.dot_dimension_numbers<[1], [0], [0], [1], [0, 0, 1, 1], [], []>} : vector<128x128xbf16>, vector<128x128xbf16>, vector<128x128xf32> -> vector<128x128xf32>
    %c2_20 = arith.constant 2 : index
    %c0_21 = arith.constant 0 : index
    %26 = vector.load %arg2[%c2_20, %c0_21] : memref<3x128xbf16, #tpu.memory_space<vmem>>, vector<1x128xbf16>
    %27 = vector.broadcast %26 : vector<1x128xbf16> to vector<32x128xbf16>
    %28 = arith.mulf %0, %27 : vector<32x128xbf16>
    %29 = arith.truncf %25 : vector<128x128xf32> to vector<128x128xbf16>
    %cst_22 = arith.constant dense<0.000000e+00> : vector<32x128xf32>
    %30 = tpu.matmul %28, %29, %cst_22 {dimension_numbers = #tpu.dot_dimension_numbers<[1], [0], [0], [1], [0, 0, 1, 1], [], []>} : vector<32x128xbf16>, vector<128x128xbf16>, vector<32x128xf32> -> vector<32x128xf32>
    %31 = arith.addf %22, %30 : vector<32x128xf32>
    %cst_23 = arith.constant 0.000000e+00 : f32
    %32 = vector.broadcast %cst_23 : f32 to vector<32x128xf32>
    %33 = arith.maximumf %31, %32 : vector<32x128xf32>
    %c0_24 = arith.constant 0 : index
    %c0_25 = arith.constant 0 : index
    %34 = vector.load %arg4[%c0_24, %c0_25] : memref<32x128xf32, #tpu.memory_space<vmem>>, vector<32x128xf32>
    tpu.vector_store %arg4[%c0_24, %c0_25], %33 {strides = array<i32>} : memref<32x128xf32, #tpu.memory_space<vmem>>, vector<32x128xf32>,
    return
  }
}

</mosaic_0001>

<bundles_post_ra>
// kernel: attentive_multi_relation_graphite.1
= control target key start
LH: loop header
LB: loop body
LE: loop exit
PB: predicated region body
PF: predicated region fallthrough
CT: control target
= control target key end

     0   :  { %vm66_vm0 = vcmask 261120   ;;  %s1048_s0 = inlined_call_operand.vmem [shape: bf16[32,128], index: 0, kind: input, shape index: {}]   ;;  %s1049_s1 = inlined_call_operand.vmem [shape: bf16[32,128], index: 1, kind: input, shape index: {}]   ;;  %s1050_s3 = inlined_call_operand.vmem [shape: bf16[3,128,128], index: 3, kind: input, shape index: {}]   ;;  %s1051_s2 = inlined_call_operand.vmem [shape: bf16[3,128], index: 2, kind: input, shape index: {}]   ;;  %s1052_s4 = inlined_call_operand.vmem [shape: f32[32,128], index: 4, kind: output, shape index: {}]  }
   0x1   :  { %v777_v0 = vld [vmem:[%s1048_s0] sm:$0xff]  ;;  %v780_v1 = vld [vmem:[%s1049_s1 + $0x8] sm:$0xff]  ;;  %v788_v9 = vld [vmem:[%s1050_s3 + $0x38] sm:$0xff] }
   0x2   :  { %38 = vxpose.xlu0.c.b16.start [1/2] (short) %v777_v0, 128  ;;  %97 = vmatpush.bf16.msra.mxu0 %v780_v1  ;;  %v779_v2 = vld [vmem:[%s1049_s1] sm:$0xff]  ;;  %v778_v3 = vld [vmem:[%s1048_s0 + $0x8] sm:$0xff]  ;;  %v796_v10 = vld [vmem:[%s1050_s3 + $0x78] sm:$0xff] }
   0x3   :  { %212 = vmatpush.bf16.msra.mxu1 %v788_v9  ;;  %350 = vmatpush.bf16.msra.mxu2 %v796_v10  ;;  %v787_v11 = vld [vmem:[%s1050_s3 + $0x30] sm:$0xff]  ;;  %v786_v14 = vld [vmem:[%s1050_s3 + $0x28] sm:$0xff]  ;;  %v785_v16 = vld [vmem:[%s1050_s3 + $0x20] sm:$0xff] }
   0x4   :  { %v795_v12 = vld [vmem:[%s1050_s3 + $0x70] sm:$0xff]  ;;  %v794_v15 = vld [vmem:[%s1050_s3 + $0x68] sm:$0xff]  ;;  %v793_v17 = vld [vmem:[%s1050_s3 + $0x60] sm:$0xff] }
   0x5   :  { %v784_v18 = vld [vmem:[%s1050_s3 + $0x18] sm:$0xff]  ;;  %v783_v20 = vld [vmem:[%s1050_s3 + $0x10] sm:$0xff]  ;;  %v782_v22 = vld [vmem:[%s1050_s3 + $0x8] sm:$0xff] }
   0x6   :  { %98 = vmatpush.bf16.msra.mxu0 %v779_v2  ;;  %v792_v19 = vld [vmem:[%s1050_s3 + $0x58] sm:$0xff]  ;;  %v791_v21 = vld [vmem:[%s1050_s3 + $0x50] sm:$0xff]  ;;  %v790_v23 = vld [vmem:[%s1050_s3 + $0x48] sm:$0xff] }
   0x7   :  { %213 = vmatpush.bf16.msra.mxu1 %v787_v11  ;;  %351 = vmatpush.bf16.msra.mxu2 %v795_v12  ;;  %v781_v25 = vld [vmem:[%s1050_s3] sm:$0xff] }
   0x8   :  { %v789_v26 = vld [vmem:[%s1050_s3 + $0x40] sm:$0xff] }
   0xb   :  { %214 = vmatpush.bf16.msra.mxu1 %v786_v14  ;;  %352 = vmatpush.bf16.msra.mxu2 %v794_v15 }
   0xf   :  { %215 = vmatpush.bf16.msra.mxu1 %v785_v16  ;;  %353 = vmatpush.bf16.msra.mxu2 %v793_v17 }
  0x12   :  { %39 = vxpose.xlu0.c.b16.end [2/2] (short) %v778_v3, 128 }
  0x13   :  { %216 = vmatpush.bf16.msra.mxu1 %v784_v18  ;;  %354 = vmatpush.bf16.msra.mxu2 %v792_v19 }
  0x17   :  { %217 = vmatpush.bf16.msra.mxu1 %v783_v20  ;;  %355 = vmatpush.bf16.msra.mxu2 %v791_v21 }
  0x1b   :  { %218 = vmatpush.bf16.msra.mxu1 %v782_v22  ;;  %356 = vmatpush.bf16.msra.mxu2 %v790_v23 }
  0x1f   :  { %219 = vmatpush.bf16.msra.mxu1 %v781_v25  ;;  %357 = vmatpush.bf16.msra.mxu2 %v789_v26 }
  0xae   :  { %v46_v4 = vpop.trf.xlu0 }
  0xaf   :  { %641 = vmatmul.msk.bf16.vlgmr.msra.gmra.mxu0 %vm66_vm0, %v46_v4 }
  0xbe   :  { %v47_v5 = vpop.trf.xlu0 }
  0xbf   :  { %642 = vmatmul.msk.bf16.gmra.mxu0 %vm66_vm0, %v47_v5 }
  0xce   :  { %v48_v6 = vpop.trf.xlu0 }
  0xcf   :  { %643 = vmatmul.msk.bf16.gmra.mxu0 %vm66_vm0, %v48_v6 }
  0xde   :  { %v49_v7 = vpop.trf.xlu0 }
  0xdf   :  { %644 = vmatmul.msk.bf16.gmra.mxu0 %vm66_vm0, %v49_v7 }
  0xee   :  { %v50_v8 = vpop.trf.xlu0 }
  0xef   :  { %645 = vmatmul.msk.bf16.gmra.mxu0 %vm66_vm0, %v50_v8 }
  0xfe   :  { %v51_v13 = vpop.trf.xlu0 }
  0xff   :  { %646 = vmatmul.msk.bf16.gmra.mxu0 %vm66_vm0, %v51_v13 }
 0x10e   :  { %v52_v24 = vpop.trf.xlu0 }
 0x10f   :  { %647 = vmatmul.msk.bf16.gmra.mxu0 %vm66_vm0, %v52_v24 }
 0x11e   :  { %v53_v27 = vpop.trf.xlu0 }
 0x11f   :  { %648 = vmatmul.msk.bf16.gmra.mxu0 %vm66_vm0, %v53_v27 }
 0x12c   :  { %v100_v28 = vpop.f32.mrf.mxu0 }
 0x134   :  { %v102_v29 = vpop.f32.mrf.mxu0 }
 0x135   :  { %v907_v30 = vpack.c.bf16 %v102_v29, %v100_v28 }
 0x137   :  { %220 = vmatmul.bf16.vlgmr.msra.gmra.mxu1 %v907_v30  ;;  %358 = vmatmul.bf16.vlgmr.msra.gmra.mxu2 %v907_v30 }
 0x13c   :  { %v105_v31 = vpop.f32.mrf.mxu0 }
 0x144   :  { %v107_v32 = vpop.f32.mrf.mxu0 }
 0x145   :  { %v911_v33 = vpack.c.bf16 %v107_v32, %v105_v31 }
 0x147   :  { %225 = vmatmul.bf16.gmra.mxu1 %v911_v33  ;;  %363 = vmatmul.bf16.gmra.mxu2 %v911_v33 }
 0x14c   :  { %v110_v34 = vpop.f32.mrf.mxu0 }
 0x154   :  { %v112_v35 = vpop.f32.mrf.mxu0 }
 0x155   :  { %v915_v36 = vpack.c.bf16 %v112_v35, %v110_v34  ;;  %v261_v35 = vld [vmem:[%s1051_s2] sm:$0x1] }
 0x157   :  { %230 = vmatmul.bf16.gmra.mxu1 %v915_v36  ;;  %368 = vmatmul.bf16.gmra.mxu2 %v915_v36 }
 0x15c   :  { %v115_v37 = vpop.f32.mrf.mxu0 }
 0x164   :  { %v117_v38 = vpop.f32.mrf.mxu0 }
 0x165   :  { %v919_v39 = vpack.c.bf16 %v117_v38, %v115_v37  ;;  %v263_v38 = vpack.i.b16 %v261_v35, %v261_v35 }
 0x167   :  { %235 = vmatmul.bf16.gmra.mxu1 %v919_v39  ;;  %373 = vmatmul.bf16.gmra.mxu2 %v919_v39 }
 0x16c   :  { %v120_v40 = vpop.f32.mrf.mxu0 }
 0x174   :  { %v122_v41 = vpop.f32.mrf.mxu0 }
 0x175   :  { %v923_v42 = vpack.c.bf16 %v122_v41, %v120_v40  ;;  %v399_v41 = vshrl.u32 %v261_v35, 16  ;;  %v570_v35 = vld [vmem:[%s1051_s2] sm:$0x2] }
 0x177   :  { %240 = vmatmul.bf16.gmra.mxu1 %v923_v42  ;;  %378 = vmatmul.bf16.gmra.mxu2 %v923_v42 }
 0x17c   :  { %v125_v43 = vpop.f32.mrf.mxu0 }
 0x184   :  { %v127_v44 = vpop.f32.mrf.mxu0 }
 0x185   :  { %v927_v45 = vpack.c.bf16 %v127_v44, %v125_v43  ;;  %v265_v43 = vperm.slane %v263_v38, 0  ;;  %v572_v38 = vpack.i.b16 %v570_v35, %v570_v35 }
 0x187   :  { %245 = vmatmul.bf16.gmra.mxu1 %v927_v45  ;;  %383 = vmatmul.bf16.gmra.mxu2 %v927_v45 }
 0x18c   :  { %v130_v46 = vpop.f32.mrf.mxu0 }
 0x194   :  { %v132_v47 = vpop.f32.mrf.mxu0 }
 0x195   :  { %v931_v48 = vpack.c.bf16 %v132_v47, %v130_v46  ;;  %v18_v46 = vld [vmem:[%s1048_s0] sm:$0xff]   ;;  %v400_v47 = vpack.i.b16 %v399_v41, %v399_v41 }
 0x197   :  { %250 = vmatmul.bf16.gmra.mxu1 %v931_v48  ;;  %388 = vmatmul.bf16.gmra.mxu2 %v931_v48 }
 0x19c   :  { %v135_v49 = vpop.f32.mrf.mxu0 }
 0x1a4   :  { %v137_v50 = vpop.f32.mrf.mxu0 }
 0x1a5   :  { %v935_v51 = vpack.c.bf16 %v137_v50, %v135_v49  ;;  %v963_v49 = vunpack.c.l.bf16 %v18_v46  ;;  %v965_v50 = vunpack.c.h.bf16 %v18_v46 }
 0x1a7   :  { %255 = vmatmul.bf16.gmra.mxu1 %v935_v51  ;;  %393 = vmatmul.bf16.gmra.mxu2 %v935_v51 }
 0x1b4   :  { %v939_v52 = vpop.f32.mrf.mxu1 }
 0x1ba   :  { %v359_v53 = vpop.f32.mrf.mxu2 }
 0x1bc   :  { %v941_v54 = vpop.f32.mrf.mxu1 }
 0x1bd   :  { %v277_v55 = vpack.c.bf16 %v941_v54, %v939_v52  ;;  %v802_v54 = vld [vmem:[%s1050_s3 + $0xa8] sm:$0xff] }
 0x1c2   :  { %v361_v56 = vpop.f32.mrf.mxu2 }
 0x1c3   :  { %v945_v57 = vpack.c.bf16 %v361_v56, %v359_v53  ;;  %v270_v53 = vunpack.c.l.bf16 %v265_v43  ;;  %v402_v56 = vperm.slane %v400_v47, 0 }
 0x1c4   :  { %v947_v58 = vpop.f32.mrf.mxu1 }
 0x1ca   :  { %v364_v59 = vpop.f32.mrf.mxu2 }
 0x1cc   :  { %v949_v60 = vpop.f32.mrf.mxu1 }
 0x1cd   :  { %v278_v61 = vpack.c.bf16 %v949_v60, %v947_v58  ;;  %v803_v58 = vld [vmem:[%s1050_s3 + $0xb0] sm:$0xff] }
 0x1d2   :  { %v366_v62 = vpop.f32.mrf.mxu2 }
 0x1d3   :  { %v953_v63 = vpack.c.bf16 %v366_v62, %v364_v59  ;;  %v271_v59 = vmul.f32 %v270_v53, %v963_v49  ;;  %v272_v62 = vmul.f32 %v270_v53, %v965_v50 }
 0x1d4   :  { %v231_v0 = vpop.f32.mrf.mxu1 }
 0x1da   :  { %v369_v1 = vpop.f32.mrf.mxu2 }
 0x1dc   :  { %v233_v2 = vpop.f32.mrf.mxu1 }
 0x1dd   :  { %v279_v3 = vpack.c.bf16 %v233_v2, %v231_v0  ;;  %v20_v0 = vld [vmem:[%s1048_s0 + $0x8] sm:$0xff]   ;;  %v403_v2 = vunpack.c.l.bf16 %v402_v56 }
 0x1df   :  { %v404_v60 = vmul.f32 %v403_v2, %v963_v49 }
 0x1e2   :  { %v371_v4 = vpop.f32.mrf.mxu2 }
 0x1e3   :  { %v955_v5 = vpack.c.bf16 %v371_v4, %v369_v1  ;;  %v804_v1 = vld [vmem:[%s1050_s3 + $0xb8] sm:$0xff]  ;;  %v982_v4 = vunpack.c.h.bf16 %v20_v0 }
 0x1e4   :  { %v236_v6 = vpop.f32.mrf.mxu1 }
 0x1ea   :  { %v374_v7 = vpop.f32.mrf.mxu2 }
 0x1ec   :  { %v238_v8 = vpop.f32.mrf.mxu1 }
 0x1ed   :  { %v280_v9 = vpack.c.bf16 %v238_v8, %v236_v6  ;;  %v275_v6 = vpack.c.bf16 %v272_v62, %v271_v59 }
 0x1f2   :  { %v376_v10 = vpop.f32.mrf.mxu2 }
 0x1f3   :  { %v413_v11 = vpack.c.bf16 %v376_v10, %v374_v7  ;;  %v407_v7 = vmul.f32 %v403_v2, %v982_v4  ;;  %v800_v10 = vld [vmem:[%s1050_s3 + $0x98] sm:$0xff] }
 0x1f4   :  { %v241_v12 = vpop.f32.mrf.mxu1 }
 0x1fa   :  { %v379_v13 = vpop.f32.mrf.mxu2 }
 0x1fc   :  { %v243_v14 = vpop.f32.mrf.mxu1 }
 0x1fd   :  { %v281_v37 = vpack.c.bf16 %v243_v14, %v241_v12  ;;  %v798_v12 = vld [vmem:[%s1050_s3 + $0x88] sm:$0xff] }
 0x202   :  { %v381_v15 = vpop.f32.mrf.mxu2 }
 0x203   :  { %v414_v44 = vpack.c.bf16 %v381_v15, %v379_v13  ;;  %v797_v13 = vld [vmem:[%s1050_s3 + $0x80] sm:$0xff] }
 0x204   :  { %v246_v16 = vpop.f32.mrf.mxu1 }
 0x20a   :  { %v384_v17 = vpop.f32.mrf.mxu2 }
 0x20c   :  { %v248_v18 = vpop.f32.mrf.mxu1 }
 0x20d   :  { %v282_v32 = vpack.c.bf16 %v248_v18, %v246_v16 }
 0x212   :  { %v386_v19 = vpop.f32.mrf.mxu2 }
 0x213   :  { %v415_v40 = vpack.c.bf16 %v386_v19, %v384_v17 }
 0x214   :  { %v251_v20 = vpop.f32.mrf.mxu1 }
 0x21a   :  { %v389_v21 = vpop.f32.mrf.mxu2 }
 0x21c   :  { %v253_v22 = vpop.f32.mrf.mxu1 }
 0x21d   :  { %v283_v28 = vpack.c.bf16 %v253_v22, %v251_v20 }
 0x222   :  { %v391_v23 = vpop.f32.mrf.mxu2 }
 0x223   :  { %v416_v34 = vpack.c.bf16 %v391_v23, %v389_v21 }
 0x224   :  { %v256_v24 = vpop.f32.mrf.mxu1 }
 0x22a   :  { %v394_v25 = vpop.f32.mrf.mxu2 }
 0x22c   :  { %v258_v26 = vpop.f32.mrf.mxu1 }
 0x22d   :  { %v284_v27 = vpack.c.bf16 %v258_v26, %v256_v24 }
 0x22f   :  { %437 = vmatpush.bf16.msra.mxu3 %v284_v27 }
 0x232   :  { %v396_v29 = vpop.f32.mrf.mxu2 }
 0x233   :  { %v417_v31 = vpack.c.bf16 %v396_v29, %v394_v25  ;;  %438 = vmatpush.bf16.msra.mxu3 %v283_v28 }
 0x235   :  { %418 = vmatpush.bf16.msrb.mxu1 %v417_v31  ;;  %805 = vmatpush.bf16.msrb.mxu2 %v417_v31 }
 0x237   :  { %439 = vmatpush.bf16.msra.mxu3 %v282_v32 }
 0x239   :  { %419 = vmatpush.bf16.msrb.mxu1 %v416_v34  ;;  %806 = vmatpush.bf16.msrb.mxu2 %v416_v34 }
 0x23b   :  { %440 = vmatpush.bf16.msra.mxu3 %v281_v37 }
 0x23d   :  { %420 = vmatpush.bf16.msrb.mxu1 %v415_v40  ;;  %807 = vmatpush.bf16.msrb.mxu2 %v415_v40  ;;  %v574_v40 = vperm.slane %v572_v38, 1 }
 0x23f   :  { %441 = vmatpush.bf16.msra.mxu3 %v280_v9  ;;  %v274_v9 = vmul.f32 %v270_v53, %v982_v4  ;;  %v575_v41 = vunpack.c.l.bf16 %v574_v40 }
 0x241   :  { %421 = vmatpush.bf16.msrb.mxu1 %v414_v44  ;;  %808 = vmatpush.bf16.msrb.mxu2 %v414_v44  ;;  %v576_v43 = vmul.f32 %v575_v41, %v963_v49  ;;  %v577_v44 = vmul.f32 %v575_v41, %v965_v50 }
 0x243   :  { %442 = vmatpush.bf16.msra.mxu3 %v279_v3  ;;  %v980_v3 = vunpack.c.l.bf16 %v20_v0  ;;  %v580_v46 = vpack.c.bf16 %v577_v44, %v576_v43 }
 0x245   :  { %422 = vmatpush.bf16.msrb.mxu1 %v413_v11  ;;  %809 = vmatpush.bf16.msrb.mxu2 %v413_v11  ;;  %v273_v8 = vmul.f32 %v270_v53, %v980_v3  ;;  %v578_v47 = vmul.f32 %v575_v41, %v980_v3  ;;  %v579_v53 = vmul.f32 %v575_v41, %v982_v4 }
 0x247   :  { %443 = vmatpush.bf16.msra.mxu3 %v278_v61  ;;  %v405_v61 = vmul.f32 %v403_v2, %v965_v50  ;;  %v276_v11 = vpack.c.bf16 %v274_v9, %v273_v8  ;;  %v581_v56 = vpack.c.bf16 %v579_v53, %v578_v47 }
 0x249   :  { %423 = vmatpush.bf16.msrb.mxu1 %v955_v5  ;;  %810 = vmatpush.bf16.msrb.mxu2 %v955_v5  ;;  %v406_v5 = vmul.f32 %v403_v2, %v980_v3  ;;  %v408_v52 = vpack.c.bf16 %v405_v61, %v404_v60 }
 0x24b   :  { %444 = vmatpush.bf16.msra.mxu3 %v277_v55  ;;  %v409_v55 = vpack.c.bf16 %v407_v7, %v406_v5 }
 0x24d   :  { %424 = vmatpush.bf16.msrb.mxu1 %v953_v63  ;;  %811 = vmatpush.bf16.msrb.mxu2 %v953_v63  ;;  %v801_v63 = vld [vmem:[%s1050_s3 + $0xa0] sm:$0xff] }
 0x24e   :  { %445 = vmatmul.bf16.vlgmr.msra.gmra.mxu3 %v275_v6 }
 0x24f   :  { %521 = vmatpush.bf16.msrb.mxu3 %v804_v1 }
 0x251   :  { %425 = vmatpush.bf16.msrb.mxu1 %v945_v57  ;;  %812 = vmatpush.bf16.msrb.mxu2 %v945_v57  ;;  %v799_v57 = vld [vmem:[%s1050_s3 + $0x90] sm:$0xff] }
 0x253   :  { %522 = vmatpush.bf16.msrb.mxu3 %v803_v58 }
 0x254   :  { %426 = vmatmul.bf16.vlgmr.msrb.gmra.mxu1 %v408_v52  ;;  %431 = vmatmul.bf16.vlgmr.msrb.gmra.mxu2 %v409_v55 }
 0x257   :  { %523 = vmatpush.bf16.msrb.mxu3 %v802_v54 }
 0x25b   :  { %524 = vmatpush.bf16.msrb.mxu3 %v801_v63 }
 0x25e   :  { %450 = vmatmul.bf16.gmra.mxu3 %v276_v11 }
 0x25f   :  { %525 = vmatpush.bf16.msrb.mxu3 %v800_v10 }
 0x263   :  { %526 = vmatpush.bf16.msrb.mxu3 %v799_v57 }
 0x267   :  { %527 = vmatpush.bf16.msrb.mxu3 %v798_v12 }
 0x26b   :  { %528 = vmatpush.bf16.msrb.mxu3 %v797_v13 }
 0x26e   :  { %529 = vmatmul.bf16.vlgmr.msrb.gmra.mxu3 %v907_v30 }
 0x27e   :  { %534 = vmatmul.bf16.gmra.mxu3 %v911_v33 }
 0x28e   :  { %539 = vmatmul.bf16.gmra.mxu3 %v915_v36 }
 0x29e   :  { %544 = vmatmul.bf16.gmra.mxu3 %v919_v39 }
 0x2ae   :  { %549 = vmatmul.bf16.gmra.mxu3 %v923_v42 }
 0x2be   :  { %554 = vmatmul.bf16.gmra.mxu3 %v927_v45 }
 0x2ce   :  { %559 = vmatmul.bf16.gmra.mxu3 %v931_v48 }
 0x2d1   :  { %v446_v14 = vpop.f32.mrf.mxu3  ;;  %v427_v59 = vpop.f32.mrf.mxu1 }
 0x2d2   :  { %v447_v62 = vadd.f32 %v446_v14, %v427_v59 }
 0x2d7   :  { %v432_v60 = vpop.f32.mrf.mxu2 }
 0x2d9   :  { %v448_v15 = vpop.f32.mrf.mxu3  ;;  %v429_v6 = vpop.f32.mrf.mxu1 }
 0x2da   :  { %v449_v49 = vadd.f32 %v448_v15, %v429_v6 }
 0x2de   :  { %564 = vmatmul.bf16.gmra.mxu3 %v935_v51 }
 0x2df   :  { %v434_v52 = vpop.f32.mrf.mxu2 }
 0x2e1   :  { %v451_v16 = vpop.f32.mrf.mxu3 }
 0x2e2   :  { %v452_v3 = vadd.f32 %v451_v16, %v432_v60 }
 0x2e9   :  { %v1026_v17 = vpop.f32.mrf.mxu3 }
 0x2ea   :  { %v454_v54 = vadd.f32 %v1026_v17, %v434_v52 }
 0x2f1   :  { %v530_v30 = vpop.f32.mrf.mxu3 }
 0x2f9   :  { %v532_v18 = vpop.f32.mrf.mxu3 }
 0x2fa   :  { %v582_v33 = vpack.c.bf16 %v532_v18, %v530_v30 }
 0x301   :  { %v535_v19 = vpop.f32.mrf.mxu3 }
 0x309   :  { %v537_v36 = vpop.f32.mrf.mxu3 }
 0x30a   :  { %v583_v20 = vpack.c.bf16 %v537_v36, %v535_v19 }
 0x311   :  { %v540_v39 = vpop.f32.mrf.mxu3 }
 0x319   :  { %v542_v21 = vpop.f32.mrf.mxu3 }
 0x31a   :  { %v584_v42 = vpack.c.bf16 %v542_v21, %v540_v39 }
 0x321   :  { %v545_v22 = vpop.f32.mrf.mxu3 }
 0x329   :  { %v547_v45 = vpop.f32.mrf.mxu3 }
 0x32a   :  { %v585_v23 = vpack.c.bf16 %v547_v45, %v545_v22 }
 0x331   :  { %v550_v48 = vpop.f32.mrf.mxu3 }
 0x339   :  { %v552_v24 = vpop.f32.mrf.mxu3 }
 0x33a   :  { %v586_v37 = vpack.c.bf16 %v552_v24, %v550_v48 }
 0x341   :  { %v555_v25 = vpop.f32.mrf.mxu3 }
 0x349   :  { %v557_v26 = vpop.f32.mrf.mxu3 }
 0x34a   :  { %v587_v34 = vpack.c.bf16 %v557_v26, %v555_v25 }
 0x351   :  { %v560_v51 = vpop.f32.mrf.mxu3 }
 0x359   :  { %v562_v27 = vpop.f32.mrf.mxu3 }
 0x35a   :  { %v588_v32 = vpack.c.bf16 %v562_v27, %v560_v51 }
 0x361   :  { %v565_v28 = vpop.f32.mrf.mxu3 }
 0x369   :  { %v567_v29 = vpop.f32.mrf.mxu3 }
 0x36a   :  { %v589_v31 = vpack.c.bf16 %v567_v29, %v565_v28 }
 0x36c   :  { %590 = vmatpush.bf16.msrb.mxu0 %v589_v31 }
 0x370   :  { %591 = vmatpush.bf16.msrb.mxu0 %v588_v32 }
 0x374   :  { %592 = vmatpush.bf16.msrb.mxu0 %v587_v34 }
 0x378   :  { %593 = vmatpush.bf16.msrb.mxu0 %v586_v37 }
 0x37c   :  { %594 = vmatpush.bf16.msrb.mxu0 %v585_v23 }
 0x380   :  { %595 = vmatpush.bf16.msrb.mxu0 %v584_v42 }
 0x384   :  { %596 = vmatpush.bf16.msrb.mxu0 %v583_v20 }
 0x388   :  { %597 = vmatpush.bf16.msrb.mxu0 %v582_v33 }
 0x38b   :  { %598 = vmatmul.bf16.vlgmr.msrb.gmra.mxu0 %v580_v46 }
 0x39b   :  { %603 = vmatmul.bf16.gmra.mxu0 %v581_v56 }
 0x408   :  { %v599_v0 = vpop.f32.mrf.mxu0 }
 0x409   :  { %v609_v1 = vadd.f32 %v599_v0, %v447_v62 }
 0x40b   :  { %v613_v2 = vmax.f32 %v609_v1, 0.0 }
 0x40d   :  { %617 = vst [vmem:[%s1052_s4] sm:$0xff] %v613_v2 }
 0x410   :  { %v601_v50 = vpop.f32.mrf.mxu0 }
 0x411   :  { %v610_v58 = vadd.f32 %v601_v50, %v449_v49 }
 0x413   :  { %v614_v61 = vmax.f32 %v610_v58, 0.0 }
 0x415   :  { %618 = vst [vmem:[%s1052_s4 + $0x8] sm:$0xff] %v614_v61 }
 0x418   :  { %v604_v4 = vpop.f32.mrf.mxu0 }
 0x419   :  { %v611_v5 = vadd.f32 %v604_v4, %v452_v3 }
 0x41b   :  { %v615_v7 = vmax.f32 %v611_v5, 0.0 }
 0x41d   :  { %619 = vst [vmem:[%s1052_s4 + $0x10] sm:$0xff] %v615_v7 }
 0x420   :  { %v606_v55 = vpop.f32.mrf.mxu0 }
 0x421   :  { %v612_v63 = vadd.f32 %v606_v55, %v454_v54 }
 0x423   :  { %v616_v8 = vmax.f32 %v612_v63, 0.0 }
 0x425   :  { %620 = vst [vmem:[%s1052_s4 + $0x18] sm:$0xff] %v616_v8 }

</bundles_post_ra>
